<compile_context>
chip_gen: v5e
topology: v5e:2x2
jax: 0.10.0
libtpu: 0.0.40
codegen_flags: <defaults>
</compile_context>

<pallas_src>
import jax
import jax.numpy as jnp
from jax.experimental import pallas as pl
from jax.experimental.pallas import tpu as pltpu


def generate_weights(h):
    """Deterministic latitude weights, matching the PyTorch generate_weights."""
    latitude = jnp.linspace(-90.0, 90.0, num=h)
    w = jnp.cos(jnp.deg2rad(latitude))
    w = w / jnp.mean(w)
    return w.reshape(h, 1).astype(jnp.float32)  # (H, 1)


def _round_up(a, b):
    return ((a + b - 1) // b) * b


def _tpu_params():
    """Best-effort query of per-generation hardware parameters (safe defaults)."""
    vmem_cap = 128 * 1024 * 1024  # v5e/v6e physical; v7x reports 64 MiB per core
    num_cores = 1
    try:
        info = pltpu.get_tpu_info()
        v = getattr(info, "vmem_capacity_bytes", None)
        if isinstance(v, int) and v > 0:
            vmem_cap = v
        for name in ("num_cores", "core_count", "num_tensorcores",
                     "tensorcores_per_chip", "cores_per_chip"):
            c = getattr(info, name, None)
            if isinstance(c, int) and c > 0:
                num_cores = c
                break
    except Exception:
        pass
    return vmem_cap, num_cores


def _rmse_loss_kernel(x_ref, y_ref, w_ref, o_ref, acc_ref):
    # grid = (nsplit [core-parallel on multi-TC chips], lane tiles, row steps)
    i = pl.program_id(2)  # row-step (reduction) axis, innermost

    @pl.when(i == 0)
    def _():
        acc_ref[...] = jnp.zeros_like(acc_ref)

    # (TB, THW) block, lane-dense.  Cast to f32 (mandatory on v5e, free filler under
    # the DMAs elsewhere).  Temporaries are accounted for in the wrapper's TB sizing.
    d = x_ref[...].astype(jnp.float32) - y_ref[...].astype(jnp.float32)
    sq = d * d
    tb, thw = sq.shape
    # Row-group reduce into the (8, THW) accumulator: splitting only the leading axis
    # is layout-free, so this is pure VPU adds (no XLU / scalar chain per step).
    acc_ref[...] += sq.reshape(tb // 8, 8, thw).sum(axis=0)

    @pl.when(i == pl.num_programs(2) - 1)
    def _():
        # Weights depend only on the lane (H*W) position, so applying them to the
        # row-reduced accumulator is exact.  One cross-lane reduce per lane tile.
        partial = jnp.sum(acc_ref[...] * w_ref[...])
        # Tiny (8,128) VMEM tile write; HBM cost is negligible vs. the input streams.
        o_ref[...] = jnp.full(o_ref.shape, partial, dtype=o_ref.dtype)


def rmse_loss(x, y, weights):
    """x, y: (B, C, H, W) NCHW. weights: (H, 1). Returns scalar weighted-MSE."""
    B, C, H, W = x.shape
    BC, HW = B * C, H * W
    numel = B * C * H * W
    itemsize = x.dtype.itemsize

    vmem_cap, num_cores = _tpu_params()
    # Scoped-VMEM limit: ~3/4 of this generation's physical VMEM, capped at 64 MiB
    # (v5e/v6e -> 64 MiB, v7x -> ~48 MiB with 16 MiB headroom on its 64 MiB VMEM).
    vmem_limit = int(min((vmem_cap // 4) * 3, 64 * 1024 * 1024))

    # Sublane alignment for the row (second-to-last) block dim, per input dtype.
    row_align = {4: 8, 2: 16, 1: 32}.get(itemsize, 8)

    # ---- lane (H*W) tiling: bound the per-step working set for huge spatial grids
    # (e.g. 721x1440) instead of blowing VMEM; pad H*W up to a multiple of the tile.
    MAX_LANE_ELEMS = 64 * 1024   # below this, one lane tile covers all of H*W
    LANE_TILE = 32 * 1024        # multiple of 128
    if HW <= MAX_LANE_ELEMS:
        THW, HW_pad, n_hw = HW, HW, 1
    else:
        THW = LANE_TILE
        HW_pad = _round_up(HW, THW)
        n_hw = HW_pad // THW

    # ---- row (B*C) tiling: as many rows per step as the VMEM budget allows.  Per-row
    # cost = 2 inputs x 2 pipeline buffers (4*itemsize) plus ~4 f32-wide temporaries
    # (up-casts, d, squares, reduce partials) that live alongside the buffers.
    bytes_per_row = THW * (4 * itemsize + 4 * 4)
    fixed = 8 * THW * 4 + 2 * THW * 4 + 4 * 1024 * 1024  # acc + weight dbuf + scratch slack
    tb_max = max(row_align,
                 ((vmem_limit - fixed) // bytes_per_row) // row_align * row_align)

    # ---- split the reduction across TensorCores only when the chip has >1 (v7x).
    # On single-TC v5e/v6e the split is a serial loop: pure padding/epilogue overhead.
    nsplit = num_cores if (num_cores > 1 and BC >= num_cores * row_align) else 1

    def build_and_run(nsplit_, split_sem_):
        rows_per_split = _round_up(max(1, -(-BC // nsplit_)), row_align)
        TB = min(tb_max, rows_per_split)
        steps = -(-rows_per_split // TB)
        BC_pad = nsplit_ * steps * TB

        x_f = x.reshape(BC, HW)
        y_f = y.reshape(BC, HW)
        pad_rows, pad_lanes = BC_pad - BC, HW_pad - HW
        if pad_rows or pad_lanes:
            cfg = ((0, pad_rows), (0, pad_lanes))
            x_f = jnp.pad(x_f, cfg)  # zero pads contribute 0 to the sum -> exact
            y_f = jnp.pad(y_f, cfg)

        # Pre-expand latitude weights once to a lane-dense (1, H*W_pad) f32 row.
        w_row = jnp.broadcast_to(
            weights.reshape(H, 1).astype(jnp.float32), (H, W)).reshape(1, HW)
        if pad_lanes:
            w_row = jnp.pad(w_row, ((0, 0), (0, pad_lanes)))

        cost = pl.CostEstimate(
            flops=3 * numel,
            transcendentals=0,
            bytes_accessed=(2 * BC_pad * HW_pad * itemsize + HW_pad * 4
                            + nsplit_ * n_hw * 8 * 128 * 4),
        )

        return pl.pallas_call(
            _rmse_loss_kernel,
            out_shape=jax.ShapeDtypeStruct((nsplit_, n_hw, 8, 128), jnp.float32),
            grid_spec=pltpu.PrefetchScalarGridSpec(
                num_scalar_prefetch=0,
                grid=(nsplit_, n_hw, steps),
                in_specs=[
                    pl.BlockSpec((TB, THW), lambda c, j, i: (c * steps + i, j)),
                    pl.BlockSpec((TB, THW), lambda c, j, i: (c * steps + i, j)),
                    pl.BlockSpec((1, THW), lambda c, j, i: (0, j)),
                ],
                out_specs=pl.BlockSpec((1, 1, 8, 128), lambda c, j, i: (c, j, 0, 0)),
                scratch_shapes=[pltpu.VMEM((8, THW), jnp.float32)],
            ),
            compiler_params=pltpu.CompilerParams(
                dimension_semantics=(split_sem_, pltpu.ARBITRARY, pltpu.ARBITRARY),
                vmem_limit_bytes=vmem_limit,
            ),
            cost_estimate=cost,
        )(x_f, y_f, w_row)

    if nsplit > 1:
        try:
            out = build_and_run(nsplit, pltpu.CORE_PARALLEL)
        except Exception:
            # Core-sharded split unavailable on this chip/runtime: single-split path.
            out = build_and_run(1, pltpu.ARBITRARY)
    else:
        out = build_and_run(1, pltpu.ARBITRARY)

    total = jnp.sum(out[:, :, 0, 0])  # combine per-split / per-lane-tile partial sums
    return total / numel


if __name__ == "__main__":
    # Small deterministic example consistent with the module (h=32 latitude axis).
    B, C, H, W = 2, 4, 32, 16
    key = jax.random.PRNGKey(0)
    kx, ky = jax.random.split(key)
    x = jax.random.normal(kx, (B, C, H, W), dtype=jnp.float32)
    y = jax.random.normal(ky, (B, C, H, W), dtype=jnp.float32)

    weights = generate_weights(H)  # (H, 1)

    loss = rmse_loss(x, y, weights)
    loss = jax.block_until_ready(loss)

    # Pure-JAX reference check.
    ref = jnp.mean((x - y) ** 2 * weights.reshape(1, 1, H, 1))
    assert jnp.allclose(loss, ref, rtol=1e-5, atol=1e-5), (loss, ref)

    print("KERNEL_OK")
</pallas_src>

<mosaic_0001>
module attributes {stable_mosaic.version = 11 : i64} {
  func.func @_rmse_loss_kernel(%arg0: i32, %arg1: i32, %arg2: i32, %arg3: memref<8x512xf32, #tpu.memory_space<vmem>>, %arg4: memref<8x512xf32, #tpu.memory_space<vmem>>, %arg5: memref<1x512xf32, #tpu.memory_space<vmem>>, %arg6: memref<1x1x8x128xf32, #tpu.memory_space<vmem>>, %arg7: memref<8x512xf32, #tpu.memory_space<vmem>>) attributes {dimension_semantics = [#tpu.dimension_semantics<arbitrary>, #tpu.dimension_semantics<arbitrary>, #tpu.dimension_semantics<arbitrary>], iteration_bounds = array<i64: 1, 1, 1>, scalar_prefetch = 0 : i64, scratch_operands = 1 : i64, tpu.core_type = #tpu.core_type<tc>, window_params = [{transform_indices = @transform_0, window_bounds = array<i64: 8, 512>}, {transform_indices = @transform_1, window_bounds = array<i64: 8, 512>}, {transform_indices = @transform_2, window_bounds = array<i64: 1, 512>}, {transform_indices = @transform_3, window_bounds = array<i64: 1, 1, 8, 128>}]} {
    %c0_i32 = arith.constant 0 : i32
    %0 = arith.cmpi eq, %arg2, %c0_i32 : i32
    %1 = arith.extui %0 : i1 to i32
    %c0_i32_0 = arith.constant 0 : i32
    %2 = arith.cmpi ne, %1, %c0_i32_0 : i32
    scf.if %2 {
      %cst_10 = arith.constant 0.000000e+00 : f32
      %15 = vector.broadcast %cst_10 : f32 to vector<8x512xf32>
      %c0_11 = arith.constant 0 : index
      %c0_12 = arith.constant 0 : index
      %16 = vector.load %arg7[%c0_11, %c0_12] : memref<8x512xf32, #tpu.memory_space<vmem>>, vector<8x512xf32>
      tpu.vector_store %arg7[%c0_11, %c0_12], %15 {strides = array<i32>} : memref<8x512xf32, #tpu.memory_space<vmem>>, vector<8x512xf32>,
    } else {
    }
    %c0 = arith.constant 0 : index
    %c0_1 = arith.constant 0 : index
    %3 = vector.load %arg3[%c0, %c0_1] : memref<8x512xf32, #tpu.memory_space<vmem>>, vector<8x512xf32>
    %c0_2 = arith.constant 0 : index
    %c0_3 = arith.constant 0 : index
    %4 = vector.load %arg4[%c0_2, %c0_3] : memref<8x512xf32, #tpu.memory_space<vmem>>, vector<8x512xf32>
    %5 = arith.subf %3, %4 : vector<8x512xf32>
    %6 = arith.mulf %5, %5 : vector<8x512xf32>
    %c0_4 = arith.constant 0 : index
    %c0_5 = arith.constant 0 : index
    %7 = vector.load %arg7[%c0_4, %c0_5] : memref<8x512xf32, #tpu.memory_space<vmem>>, vector<8x512xf32>
    %8 = vector.shape_cast %6 : vector<8x512xf32> to vector<1x8x512xf32>
    %cst = arith.constant dense<0.000000e+00> : vector<8x512xf32>
    %9 = vector.multi_reduction <add>, %8, %cst [0] : vector<1x8x512xf32> to vector<8x512xf32>
    %10 = arith.addf %7, %9 : vector<8x512xf32>
    %c0_6 = arith.constant 0 : index
    %c0_7 = arith.constant 0 : index
    %11 = vector.load %arg7[%c0_6, %c0_7] : memref<8x512xf32, #tpu.memory_space<vmem>>, vector<8x512xf32>
    tpu.vector_store %arg7[%c0_6, %c0_7], %10 {strides = array<i32>} : memref<8x512xf32, #tpu.memory_space<vmem>>, vector<8x512xf32>,
    %c0_i32_8 = arith.constant 0 : i32
    %12 = arith.cmpi eq, %arg2, %c0_i32_8 : i32
    %13 = arith.extui %12 : i1 to i32
    %c0_i32_9 = arith.constant 0 : i32
    %14 = arith.cmpi ne, %13, %c0_i32_9 : i32
    scf.if %14 {
      %c0_10 = arith.constant 0 : index
      %c0_11 = arith.constant 0 : index
      %15 = vector.load %arg7[%c0_10, %c0_11] : memref<8x512xf32, #tpu.memory_space<vmem>>, vector<8x512xf32>
      %c0_12 = arith.constant 0 : index
      %c0_13 = arith.constant 0 : index
      %16 = vector.load %arg5[%c0_12, %c0_13] : memref<1x512xf32, #tpu.memory_space<vmem>>, vector<1x512xf32>
      %17 = vector.broadcast %16 : vector<1x512xf32> to vector<8x512xf32>
      %18 = arith.mulf %15, %17 : vector<8x512xf32>
      %19 = vector.shape_cast %18 : vector<8x512xf32> to vector<1x8x512xf32>
      %cst_14 = arith.constant dense<0.000000e+00> : vector<1xf32>
      %20 = vector.multi_reduction <add>, %19, %cst_14 [1, 2] : vector<1x8x512xf32> to vector<1xf32>
      %21 = vector.shape_cast %20 : vector<1xf32> to vector<1x1x1xf32>
      %22 = vector.extract %21[0, 0, 0] : f32 from vector<1x1x1xf32>
      %23 = vector.broadcast %22 : f32 to vector<1x1x8x128xf32>
      %c0_15 = arith.constant 0 : index
      %c0_16 = arith.constant 0 : index
      %c0_17 = arith.constant 0 : index
      %c0_18 = arith.constant 0 : index
      %24 = vector.load %arg6[%c0_15, %c0_16, %c0_17, %c0_18] : memref<1x1x8x128xf32, #tpu.memory_space<vmem>>, vector<1x1x8x128xf32>
      tpu.vector_store %arg6[%c0_15, %c0_16, %c0_17, %c0_18], %23 {strides = array<i32>} : memref<1x1x8x128xf32, #tpu.memory_space<vmem>>, vector<1x1x8x128xf32>,
    } else {
    }
    return
  }
  func.func @transform_0(%arg0: i32, %arg1: i32, %arg2: i32) -> (i32, i32) {
    %c1_i32 = arith.constant 1 : i32
    %0 = arith.muli %arg0, %c1_i32 : i32
    %1 = arith.addi %0, %arg2 : i32
    %c0_i32 = arith.constant 0 : i32
    return %1, %arg1 : i32, i32
  }
  func.func @transform_1(%arg0: i32, %arg1: i32, %arg2: i32) -> (i32, i32) {
    %c1_i32 = arith.constant 1 : i32
    %0 = arith.muli %arg0, %c1_i32 : i32
    %1 = arith.addi %0, %arg2 : i32
    %c0_i32 = arith.constant 0 : i32
    return %1, %arg1 : i32, i32
  }
  func.func @transform_2(%arg0: i32, %arg1: i32, %arg2: i32) -> (i32, i32) {
    %c0_i32 = arith.constant 0 : i32
    %c0_i32_0 = arith.constant 0 : i32
    return %c0_i32, %arg1 : i32, i32
  }
  func.func @transform_3(%arg0: i32, %arg1: i32, %arg2: i32) -> (i32, i32, i32, i32) {
    %c0_i32 = arith.constant 0 : i32
    %c0_i32_0 = arith.constant 0 : i32
    %c0_i32_1 = arith.constant 0 : i32
    return %arg0, %arg1, %c0_i32, %c0_i32_0 : i32, i32, i32, i32
  }
}

</mosaic_0001>

<bundles_post_ra>
// kernel: tpu_custom_call.1
= control target key start
LH: loop header
LB: loop body
LE: loop exit
PB: predicated region body
PF: predicated region fallthrough
CT: control target
= control target key end

     0   :  { %8 = vsyncpa [#allocation4], 0  ;;  %s303_s0 = inlined_call_operand.hbm [shape: f32[8,512], index: 0, kind: input, shape index: {}]   ;;  %s304_s1 = inlined_call_operand.hbm [shape: f32[8,512], index: 1, kind: input, shape index: {}]   ;;  %s305_s2 = inlined_call_operand.hbm [shape: f32[1,512], index: 2, kind: input, shape index: {}]   ;;  %s306_s3 = inlined_call_operand.hbm [shape: f32[1,1,8,128], index: 3, kind: output, shape index: {}]  }
   0x1   :  { %9 = vsyncpa [#allocation7], 0  ;;  %s35_s14 = sshll.u32 %s304_s1, 4  ;;  %s36_s14 = int_to_ptr.hbm [resolvable:$true] %s35_s14 }
   0x2   :  { %10 = vsyncpa [#allocation5], 0  ;;  %s267_s15 = smov [#allocation6]   ;;  %s20_s19 = sshll.u32 %s303_s0, 4  ;;  %s21_s19 = int_to_ptr.hbm [resolvable:$true] %s20_s19 }
   0x3   :  { %s37_s16 = sshll.u32 %s267_s15, 4  ;;  %s268_s20 = smov [#allocation3]   ;;  %s38_s16 = int_to_ptr.vmem [resolvable:$true] %s37_s16 }
   0x4   :  { %40 = dma.hbm_to_vmem [thread:$0]  %s36_s14, 512, %s38_s16, [#allocation7]  }
   0x5   :  { %s22_s21 = sshll.u32 %s268_s20, 4  ;;  %s46_s24 = sshll.u32 %s305_s2, 4  ;;  %s23_s21 = int_to_ptr.vmem [resolvable:$true] %s22_s21  ;;  %s47_s24 = int_to_ptr.hbm [resolvable:$true] %s46_s24 }
   0x6   :  { %25 = dma.hbm_to_vmem [thread:$0]  %s21_s19, 512, %s23_s21, [#allocation4]  }
   0x7   :  { %s269_s1 = smov [#allocation8]  }
   0x8   :  { %s48_s25 = sshll.u32 %s269_s1, 4  ;;  %s49_s25 = int_to_ptr.vmem [resolvable:$true] %s48_s25 }
   0x9   :  { %51 = dma.hbm_to_vmem [thread:$0]  %s47_s24, 64, %s49_s25, [#allocation7]  }
   0xa   :  { %261 = dma.done.wait [#allocation4], 512  }
   0xb   :  { %262 = vsyncadd [#allocation4], 4294966784 }
   0xc   :  { %263 = dma.done.wait [#allocation7], 576  }
   0xd   :  { %264 = vsyncadd [#allocation7], 4294966720  ;;  %v74_v0 = vld [vmem:[#allocation3] sm:$0xff]  ;;  %v75_v1 = vld [vmem:[#allocation3 + $0x8] sm:$0xff]  ;;  %s270_s0 = smov [#allocation9]   ;;  %s148_s28 = sshll.u32 %s306_s3, 4  ;;  %s149_s28 = int_to_ptr.hbm [resolvable:$true] %s148_s28 }
   0xe   :  { %v76_v2 = vld [vmem:[#allocation3 + $0x10] sm:$0xff]  ;;  %v77_v3 = vld [vmem:[#allocation3 + $0x18] sm:$0xff]  ;;  %v78_v4 = vld [vmem:[#allocation6] sm:$0xff]  ;;  %s146_s2 = sshll.u32 %s270_s0, 4  ;;  %s147_s2 = int_to_ptr.vmem [resolvable:$true] %s146_s2 }
   0xf   :  { %v79_v5 = vld [vmem:[#allocation6 + $0x8] sm:$0xff]  ;;  %v80_v6 = vld [vmem:[#allocation6 + $0x10] sm:$0xff]  ;;  %v81_v7 = vld [vmem:[#allocation6 + $0x18] sm:$0xff]  ;;  %v82_v8 = vsub.f32 %v74_v0, %v78_v4 }
  0x10   :  { %v83_v9 = vsub.f32 %v75_v1, %v79_v5  ;;  %v113_v10 = vld [vmem:[#allocation8] sm:$0xf]  ;;  %v84_v11 = vsub.f32 %v76_v2, %v80_v6  ;;  %v85_v12 = vsub.f32 %v77_v3, %v81_v7 }
  0x11   :  { %v115_v13 = vperm.slane %v113_v10, 0  ;;  %v116_v14 = vperm.slane %v113_v10, 1  ;;  %v86_v15 = vmul.f32 %v82_v8, %v82_v8  ;;  %v117_v17 = vperm.slane %v113_v10, 2 }
  0x12   :  { %v87_v16 = vmul.f32 %v83_v9, %v83_v9  ;;  %v118_v18 = vperm.slane %v113_v10, 3  ;;  %v88_v19 = vmul.f32 %v84_v11, %v84_v11  ;;  %v89_v20 = vmul.f32 %v85_v12, %v85_v12 }
  0x13   :  { %v123_v21 = vmul.f32 %v115_v13, %v86_v15 }
  0x14   :  { %v124_v22 = vmul.f32 %v116_v14, %v87_v16  ;;  %v125_v23 = vmul.f32 %v117_v17, %v88_v19  ;;  %v126_v24 = vmul.f32 %v118_v18, %v89_v20 }
  0x16   :  { %v127_v25 = vadd.f32 %v124_v22, %v123_v21 }
  0x18   :  { %v128_v26 = vadd.f32 %v127_v25, %v125_v23 }
  0x1a   :  { %v129_v27 = vadd.f32 %v128_v26, %v126_v24 }
  0x1c   :  { %130 = vadd.xlane.f32.xlu0 %v129_v27 }
  0x8f   :  { %v131_v28 = vpop.xlane.xlu0 %130 }
  0x90   :  { %v132_v29 = vrot.slane %v131_v28, 4 }
  0x92   :  { %v133_v30 = vadd.f32 %v132_v29, %v131_v28 }
  0x94   :  { %v134_v31 = vrot.slane %v133_v30, 2 }
  0x96   :  { %v135_v32 = vadd.f32 %v134_v31, %v133_v30 }
  0x98   :  { %v136_v33 = vrot.slane %v135_v32, 1 }
  0x9a   :  { %v137_v34 = vadd.f32 %v136_v33, %v135_v32 }
  0x9c   :  { %159 = vpush %v137_v34 }
  0xcd   :  { %s160_s29 = spop %159 }
  0xce   :  { %v139_v35 = vstv %s160_s29 }
  0xcf   :  { %140 = vst [vmem:[#allocation9] sm:$0xff] %v139_v35 }
  0xd0   :  { %151 = dma.vmem_to_hbm [thread:$0]  %s147_s2, 128, %s149_s28, [#allocation5]  }
  0xd1   :  { %265 = dma.done.wait [#allocation5], 128  }
  0xd2   :  { %266 = vsyncadd [#allocation5], 4294967168 }
  0xd3   :  { %156 = vsyncpa [#allocation4], 1 }
  0xd4   :  { %157 = vsyncpa [#allocation7], 1 }
  0xd5   :  { %158 = vsyncpa [#allocation5], 1 }

</bundles_post_ra>
